<compile_context>
chip_gen: v7x
topology: tpu7x:2x2x1
jax: 0.10.0
libtpu: 0.0.40
codegen_flags: <defaults>
</compile_context>

<pallas_src>
import functools

import jax
import jax.numpy as jnp
from jax.experimental import pallas as pl
from jax.experimental.pallas import tpu as pltpu


def _round_up(x, m):
    return (x + m - 1) // m * m


# -----------------------------------------------------------------------------
# Pallas kernel: fused fc1 -> act -> fc2 -> act -> fc3 for one batch tile.
# -----------------------------------------------------------------------------
def _critic_mlp_kernel(x_ref, w1_ref, b1_ref, w2_ref, b2_ref, w3_ref, b3_ref,
                       out_ref, *, use_relu):
    # x_ref:  [TB, D]  f32      w1_ref: [D, Hp]  bf16    b1_ref: [1, Hp] f32
    # w2_ref: [Hp, Hp] bf16     b2_ref: [1, Hp]  f32
    # w3_ref: [1, Hp]  bf16     b3_ref: [1, 1]   f32
    # out_ref: [1, TB] f32      (per-row values along the lane axis)
    bf16 = jnp.bfloat16

    def act(z_f32):
        zb = z_f32.astype(bf16)          # bf16 activation (EUP/VPU savings)
        if use_relu:
            return jnp.maximum(zb, jnp.zeros_like(zb))
        return jnp.tanh(zb)

    x = x_ref[...].astype(bf16)                                  # cast in VMEM
    z1 = jnp.dot(x, w1_ref[...],
                 preferred_element_type=jnp.float32) + b1_ref[...]
    h1 = act(z1)                                                 # [TB, Hp] bf16
    z2 = jnp.dot(h1, w2_ref[...],
                 preferred_element_type=jnp.float32) + b2_ref[...]
    h2 = act(z2)                                                 # [TB, Hp] bf16
    # fc3 as w3 @ h2^T ("NT" contraction): result is [1, TB] with the batch
    # tile on lanes -> unmasked lane-dense store.
    v = jax.lax.dot_general(
        w3_ref[...], h2,
        dimension_numbers=(((1,), (1,)), ((), ())),
        preferred_element_type=jnp.float32)                      # [1, TB] f32
    out_ref[...] = v + b3_ref[...]


# -----------------------------------------------------------------------------
# One-time parameter preparation (hoisted out of the per-forward path).
# -----------------------------------------------------------------------------
def prepare_critic_mlp_params(params):
    """Pad the hidden dim to 128 lanes and cast weights to bf16 (done once)."""
    D, H = params["w1"].shape
    Hp = _round_up(max(H, 1), 128)
    bf16, f32 = jnp.bfloat16, jnp.float32
    w1p = jnp.zeros((D, Hp), bf16).at[:, :H].set(params["w1"].astype(bf16))
    b1p = jnp.zeros((1, Hp), f32).at[:, :H].set(
        params["b1"].reshape(1, H).astype(f32))
    w2p = jnp.zeros((Hp, Hp), bf16).at[:H, :H].set(params["w2"].astype(bf16))
    b2p = jnp.zeros((1, Hp), f32).at[:, :H].set(
        params["b2"].reshape(1, H).astype(f32))
    w3p = jnp.zeros((1, Hp), bf16).at[:, :H].set(
        params["w3"].reshape(H, 1).T.astype(bf16))
    b3p = params["b3"].reshape(1, 1).astype(f32)
    return {"w1": w1p, "b1": b1p, "w2": w2p, "b2": b2p, "w3": w3p, "b3": b3p}


def _choose_tile_b(B, tile_b_max=1024):
    """Pick a batch tile: 1 tile for tiny batches, >=2 tiles otherwise so the
    parallel grid axis can shard across both v7x TensorCores; cap at 1024."""
    B128 = _round_up(max(B, 1), 128)
    if B128 <= 128:
        return 128
    if B128 <= 2 * tile_b_max:
        return _round_up((B128 + 1) // 2, 128)
    return tile_b_max


# -----------------------------------------------------------------------------
# Forward pass.
# -----------------------------------------------------------------------------
def critic_mlp_forward(critic_input, prepped, *, use_relu=False, tile_b=None):
    """Critic_MLP forward via a fused Pallas TPU kernel.

    critic_input: [B, D] float
    prepped: output of prepare_critic_mlp_params(params)
    returns: value [B, 1] float32
    """
    B, D = critic_input.shape
    assert prepped["w1"].shape[0] == D, "feature dim mismatch"
    Hp = prepped["w1"].shape[1]

    if tile_b is None:
        tile_b = _choose_tile_b(B)
    tile_b = max(128, _round_up(int(tile_b), 128))
    B_pad = _round_up(B, tile_b)
    num_tiles = B_pad // tile_b

    # Activations go in as raw f32 (no bf16/pad copy); only pad the batch dim
    # when it is not a multiple of the tile (zero rows are exact & discarded).
    x = critic_input.astype(jnp.float32)
    if B_pad != B:
        x = jnp.pad(x, ((0, B_pad - B), (0, 0)))

    # VMEM budget: pipeline I/O buffers + resident weights + intermediates.
    bytes_io = 2 * tile_b * D * 4 + 2 * tile_b * 4          # x tile + out row
    bytes_w = 2 * 2 * (D * Hp + Hp * Hp + Hp)                # bf16 weights x2
    bytes_b = 2 * 4 * (2 * Hp + 1)                           # f32 biases x2
    bytes_inter = tile_b * Hp * (4 + 4 + 2 + 2) + tile_b * 4  # z1,z2,h1,h2,v
    vmem_bytes = bytes_io + bytes_w + bytes_b + bytes_inter
    vmem_limit = int(min(2 * vmem_bytes + (4 << 20), 40 << 20))

    kernel = functools.partial(_critic_mlp_kernel, use_relu=use_relu)

    out = pl.pallas_call(
        kernel,
        out_shape=jax.ShapeDtypeStruct((1, B_pad), jnp.float32),
        grid_spec=pltpu.PrefetchScalarGridSpec(
            num_scalar_prefetch=0,
            grid=(num_tiles,),
            in_specs=[
                pl.BlockSpec((tile_b, D), lambda i: (i, 0)),   # x tile (f32)
                pl.BlockSpec((D, Hp), lambda i: (0, 0)),       # w1
                pl.BlockSpec((1, Hp), lambda i: (0, 0)),       # b1
                pl.BlockSpec((Hp, Hp), lambda i: (0, 0)),      # w2
                pl.BlockSpec((1, Hp), lambda i: (0, 0)),       # b2
                pl.BlockSpec((1, Hp), lambda i: (0, 0)),       # w3 row
                pl.BlockSpec((1, 1), lambda i: (0, 0)),        # b3
            ],
            out_specs=pl.BlockSpec((1, tile_b), lambda i: (0, i)),
        ),
        compiler_params=pltpu.CompilerParams(
            dimension_semantics=("parallel",),
            vmem_limit_bytes=vmem_limit),
    )(x, prepped["w1"], prepped["b1"], prepped["w2"], prepped["b2"],
      prepped["w3"], prepped["b3"])

    return out[0, :B].reshape(B, 1)


def critic_mlp_apply(critic_input, params, *, use_relu=False, tile_b=None):
    """Convenience one-shot wrapper (prepares weights on every call)."""
    return critic_mlp_forward(critic_input, prepare_critic_mlp_params(params),
                              use_relu=use_relu, tile_b=tile_b)


# -----------------------------------------------------------------------------
# Deterministic parameter init (emulating orthogonal_init with gain=1, bias=0).
# -----------------------------------------------------------------------------
def _orthogonal(key, shape, gain=1.0, dtype=jnp.float32):
    rows, cols = shape
    n = max(rows, cols)
    a = jax.random.normal(key, (n, n), dtype=jnp.float32)
    q, r = jnp.linalg.qr(a)
    q = q * jnp.sign(jnp.diag(r))
    return (gain * q[:rows, :cols]).astype(dtype)


def init_critic_mlp_params(key, critic_input_dim, mlp_hidden_dim):
    k1, k2, k3 = jax.random.split(key, 3)
    return {
        "w1": _orthogonal(k1, (critic_input_dim, mlp_hidden_dim)),
        "b1": jnp.zeros((1, mlp_hidden_dim), jnp.float32),
        "w2": _orthogonal(k2, (mlp_hidden_dim, mlp_hidden_dim)),
        "b2": jnp.zeros((1, mlp_hidden_dim), jnp.float32),
        "w3": _orthogonal(k3, (mlp_hidden_dim, 1)),
        "b3": jnp.zeros((1, 1), jnp.float32),
    }


# Pure-JAX references for verification.
def _reference_forward_f32(x, p):
    h1 = jnp.tanh(x @ p["w1"] + p["b1"])
    h2 = jnp.tanh(h1 @ p["w2"] + p["b2"])
    return h2 @ p["w3"] + p["b3"]


def _reference_forward_bf16(x, p):
    # Mirrors the kernel's numerics: bf16 MXU operands, f32 accumulation and
    # bias add, bf16 activations.
    bf16 = jnp.bfloat16
    z1 = jnp.dot(x.astype(bf16), p["w1"].astype(bf16),
                 preferred_element_type=jnp.float32) + p["b1"]
    h1 = jnp.tanh(z1.astype(bf16))
    z2 = jnp.dot(h1, p["w2"].astype(bf16),
                 preferred_element_type=jnp.float32) + p["b2"]
    h2 = jnp.tanh(z2.astype(bf16))
    return jnp.dot(h2, p["w3"].astype(bf16),
                   preferred_element_type=jnp.float32) + p["b3"]


if __name__ == "__main__":
    key = jax.random.PRNGKey(0)
    k_params, k_x, k_x2 = jax.random.split(key, 3)

    batch = 16
    critic_input_dim = 16
    mlp_hidden_dim = 32

    params = init_critic_mlp_params(k_params, critic_input_dim, mlp_hidden_dim)
    prepped = prepare_critic_mlp_params(params)   # one-time weight prep

    # Small batch (single tile).
    x = jax.random.normal(k_x, (batch, critic_input_dim), dtype=jnp.float32)
    value = critic_mlp_forward(x, prepped)
    value = jax.block_until_ready(value)
    assert value.shape == (batch, 1)

    ref_bf = _reference_forward_bf16(x, params)
    ref_32 = _reference_forward_f32(x, params)
    err_bf = float(jnp.max(jnp.abs(value - ref_bf)))
    err_32 = float(jnp.max(jnp.abs(value - ref_32)))
    assert err_bf < 2e-2, f"bf16-matched reference max abs err {err_bf}"
    assert err_32 < 1e-1, f"f32 reference max abs err {err_32}"

    # Larger, non-divisible batch (exercises multi-tile grid + batch padding).
    batch2 = 300
    x2 = jax.random.normal(k_x2, (batch2, critic_input_dim), dtype=jnp.float32)
    value2 = jax.block_until_ready(critic_mlp_forward(x2, prepped))
    assert value2.shape == (batch2, 1)
    err2_bf = float(jnp.max(jnp.abs(value2 - _reference_forward_bf16(x2, params))))
    err2_32 = float(jnp.max(jnp.abs(value2 - _reference_forward_f32(x2, params))))
    assert err2_bf < 2e-2, f"bf16-matched reference max abs err {err2_bf}"
    assert err2_32 < 1e-1, f"f32 reference max abs err {err2_32}"

    print("KERNEL_OK")
</pallas_src>

<mosaic_0001>
module attributes {stable_mosaic.version = 11 : i64} {
  func.func @_critic_mlp_kernel(%arg0: i32, %arg1: memref<128x16xf32, #tpu.memory_space<vmem>>, %arg2: memref<16x128xbf16, #tpu.memory_space<vmem>>, %arg3: memref<1x128xf32, #tpu.memory_space<vmem>>, %arg4: memref<128x128xbf16, #tpu.memory_space<vmem>>, %arg5: memref<1x128xf32, #tpu.memory_space<vmem>>, %arg6: memref<1x128xbf16, #tpu.memory_space<vmem>>, %arg7: memref<1x1xf32, #tpu.memory_space<vmem>>, %arg8: memref<1x128xf32, #tpu.memory_space<vmem>>) attributes {dimension_semantics = [#tpu.dimension_semantics<parallel>], iteration_bounds = array<i64: 1>, scalar_prefetch = 0 : i64, scratch_operands = 0 : i64, tpu.core_type = #tpu.core_type<tc>, window_params = [{transform_indices = @transform_0, window_bounds = array<i64: 128, 16>}, {pipeline_mode = #tpu.pipeline_mode<synchronous>, transform_indices = @transform_1, window_bounds = array<i64: 16, 128>}, {pipeline_mode = #tpu.pipeline_mode<synchronous>, transform_indices = @transform_2, window_bounds = array<i64: 1, 128>}, {pipeline_mode = #tpu.pipeline_mode<synchronous>, transform_indices = @transform_3, window_bounds = array<i64: 128, 128>}, {pipeline_mode = #tpu.pipeline_mode<synchronous>, transform_indices = @transform_4, window_bounds = array<i64: 1, 128>}, {pipeline_mode = #tpu.pipeline_mode<synchronous>, transform_indices = @transform_5, window_bounds = array<i64: 1, 128>}, {pipeline_mode = #tpu.pipeline_mode<synchronous>, transform_indices = @transform_6, window_bounds = array<i64: 1, 1>}, {transform_indices = @transform_7, window_bounds = array<i64: 1, 128>}]} {
    %c0 = arith.constant 0 : index
    %c0_0 = arith.constant 0 : index
    %0 = vector.load %arg1[%c0, %c0_0] : memref<128x16xf32, #tpu.memory_space<vmem>>, vector<128x16xf32>
    %1 = arith.truncf %0 : vector<128x16xf32> to vector<128x16xbf16>
    %c0_1 = arith.constant 0 : index
    %c0_2 = arith.constant 0 : index
    %2 = vector.load %arg2[%c0_1, %c0_2] : memref<16x128xbf16, #tpu.memory_space<vmem>>, vector<16x128xbf16>
    %cst = arith.constant dense<0.000000e+00> : vector<128x128xf32>
    %3 = tpu.matmul %1, %2, %cst {dimension_numbers = #tpu.dot_dimension_numbers<[1], [0], [0], [1], [0, 0, 1, 1], [], []>} : vector<128x16xbf16>, vector<16x128xbf16>, vector<128x128xf32> -> vector<128x128xf32>
    %c0_3 = arith.constant 0 : index
    %c0_4 = arith.constant 0 : index
    %4 = vector.load %arg3[%c0_3, %c0_4] : memref<1x128xf32, #tpu.memory_space<vmem>>, vector<1x128xf32>
    %5 = vector.broadcast %4 : vector<1x128xf32> to vector<128x128xf32>
    %6 = arith.addf %3, %5 : vector<128x128xf32>
    %7 = arith.truncf %6 : vector<128x128xf32> to vector<128x128xbf16>
    %8 = math.tanh %7 : vector<128x128xbf16>
    %c0_5 = arith.constant 0 : index
    %c0_6 = arith.constant 0 : index
    %9 = vector.load %arg4[%c0_5, %c0_6] : memref<128x128xbf16, #tpu.memory_space<vmem>>, vector<128x128xbf16>
    %cst_7 = arith.constant dense<0.000000e+00> : vector<128x128xf32>
    %10 = tpu.matmul %8, %9, %cst_7 {dimension_numbers = #tpu.dot_dimension_numbers<[1], [0], [0], [1], [0, 0, 1, 1], [], []>} : vector<128x128xbf16>, vector<128x128xbf16>, vector<128x128xf32> -> vector<128x128xf32>
    %c0_8 = arith.constant 0 : index
    %c0_9 = arith.constant 0 : index
    %11 = vector.load %arg5[%c0_8, %c0_9] : memref<1x128xf32, #tpu.memory_space<vmem>>, vector<1x128xf32>
    %12 = vector.broadcast %11 : vector<1x128xf32> to vector<128x128xf32>
    %13 = arith.addf %10, %12 : vector<128x128xf32>
    %14 = arith.truncf %13 : vector<128x128xf32> to vector<128x128xbf16>
    %15 = math.tanh %14 : vector<128x128xbf16>
    %c0_10 = arith.constant 0 : index
    %c0_11 = arith.constant 0 : index
    %16 = vector.load %arg6[%c0_10, %c0_11] : memref<1x128xbf16, #tpu.memory_space<vmem>>, vector<1x128xbf16>
    %cst_12 = arith.constant dense<0.000000e+00> : vector<1x128xf32>
    %17 = tpu.matmul %16, %15, %cst_12 {dimension_numbers = #tpu.dot_dimension_numbers<[1], [1], [0], [0], [0, 0, 1, 0], [], []>} : vector<1x128xbf16>, vector<128x128xbf16>, vector<1x128xf32> -> vector<1x128xf32>
    %c0_13 = arith.constant 0 : index
    %c0_14 = arith.constant 0 : index
    %18 = vector.load %arg7[%c0_13, %c0_14] : memref<1x1xf32, #tpu.memory_space<vmem>>, vector<1x1xf32>
    %19 = vector.broadcast %18 : vector<1x1xf32> to vector<1x128xf32>
    %20 = arith.addf %17, %19 : vector<1x128xf32>
    %c0_15 = arith.constant 0 : index
    %c0_16 = arith.constant 0 : index
    %21 = vector.load %arg8[%c0_15, %c0_16] : memref<1x128xf32, #tpu.memory_space<vmem>>, vector<1x128xf32>
    tpu.vector_store %arg8[%c0_15, %c0_16], %20 {strides = array<i32>} : memref<1x128xf32, #tpu.memory_space<vmem>>, vector<1x128xf32>,
    return
  }
  func.func @transform_0(%arg0: i32) -> (i32, i32) {
    %c0_i32 = arith.constant 0 : i32
    %c0_i32_0 = arith.constant 0 : i32
    return %arg0, %c0_i32 : i32, i32
  }
  func.func @transform_1(%arg0: i32) -> (i32, i32) {
    %c0_i32 = arith.constant 0 : i32
    %c0_i32_0 = arith.constant 0 : i32
    %c0_i32_1 = arith.constant 0 : i32
    return %c0_i32, %c0_i32_0 : i32, i32
  }
  func.func @transform_2(%arg0: i32) -> (i32, i32) {
    %c0_i32 = arith.constant 0 : i32
    %c0_i32_0 = arith.constant 0 : i32
    %c0_i32_1 = arith.constant 0 : i32
    return %c0_i32, %c0_i32_0 : i32, i32
  }
  func.func @transform_3(%arg0: i32) -> (i32, i32) {
    %c0_i32 = arith.constant 0 : i32
    %c0_i32_0 = arith.constant 0 : i32
    %c0_i32_1 = arith.constant 0 : i32
    return %c0_i32, %c0_i32_0 : i32, i32
  }
  func.func @transform_4(%arg0: i32) -> (i32, i32) {
    %c0_i32 = arith.constant 0 : i32
    %c0_i32_0 = arith.constant 0 : i32
    %c0_i32_1 = arith.constant 0 : i32
    return %c0_i32, %c0_i32_0 : i32, i32
  }
  func.func @transform_5(%arg0: i32) -> (i32, i32) {
    %c0_i32 = arith.constant 0 : i32
    %c0_i32_0 = arith.constant 0 : i32
    %c0_i32_1 = arith.constant 0 : i32
    return %c0_i32, %c0_i32_0 : i32, i32
  }
  func.func @transform_6(%arg0: i32) -> (i32, i32) {
    %c0_i32 = arith.constant 0 : i32
    %c0_i32_0 = arith.constant 0 : i32
    %c0_i32_1 = arith.constant 0 : i32
    return %c0_i32, %c0_i32_0 : i32, i32
  }
  func.func @transform_7(%arg0: i32) -> (i32, i32) {
    %c0_i32 = arith.constant 0 : i32
    %c0_i32_0 = arith.constant 0 : i32
    return %c0_i32, %arg0 : i32, i32
  }
}

</mosaic_0001>

<bundles_post_ra>
// kernel: tpu_custom_call.1
= control target key start
LH: loop header
LB: loop body
LE: loop exit
PB: predicated region body
PF: predicated region fallthrough
CT: control target
= control target key end

     0   :  { %s810_s0 = inlined_call_operand.vmem [shape: f32[128,16], index: 0, kind: input, shape index: {}]   ;;  %s811_s1 = inlined_call_operand.vmem [shape: bf16[16,128], index: 1, kind: input, shape index: {}]   ;;  %s812_s2 = inlined_call_operand.vmem [shape: f32[1,128], index: 2, kind: input, shape index: {}]   ;;  %s813_s3 = inlined_call_operand.vmem [shape: bf16[128,128], index: 3, kind: input, shape index: {}]   ;;  %s814_s4 = inlined_call_operand.vmem [shape: f32[1,128], index: 4, kind: input, shape index: {}]   ;;  %s815_s5 = inlined_call_operand.vmem [shape: bf16[1,128], index: 5, kind: input, shape index: {}]   ;;  %s816_s6 = inlined_call_operand.<no memory space> [shape: f32[1,1], index: 6, kind: input, shape index: {}]   ;;  %s817_s7 = inlined_call_operand.hbm [shape: f32[1,128], index: 7, kind: output, shape index: {}]  }
   0x1   :  { %v12_v0 = vstv %s816_s6 }
   0x2   :  { %13 = vst [vmem:[#allocation2] sm:$0x1] %v12_v0 }
   0x3   :  { %v585_v1 = vld [vmem:[%s811_s1] sm:$0xff]   ;;  %v31_v3 = vld [vmem:[%s810_s0 + $0x8] sm:$0xff]  ;;  %vm69_vm0 = vcmask 130048   ;;  %v32_v4 = vld [vmem:[%s810_s0 + $0x10] sm:$0xff] }
   0x4   :  { %v30_v2 = vld [vmem:[%s810_s0] sm:$0xff]  ;;  %510 = vmatprep.subr.bf16.mxu1 %v585_v1  ;;  %v33_v6 = vld [vmem:[%s810_s0 + $0x18] sm:$0xff]  ;;  %v35_v8 = vld [vmem:[%s810_s0 + $0x28] sm:$0xff] }
   0x5   :  { %v46_v5 = vpack.c.bf16 %v31_v3, %v30_v2  ;;  %v34_v7 = vld [vmem:[%s810_s0 + $0x20] sm:$0xff]  ;;  %511 = vmatpush3.bf16.msra.mxu1 %v585_v1  ;;  %v47_v9 = vpack.c.bf16 %v33_v6, %v32_v4  ;;  %v36_v11 = vld [vmem:[%s810_s0 + $0x30] sm:$0xff]  ;;  %v37_v12 = vld [vmem:[%s810_s0 + $0x38] sm:$0xff] }
   0x6   :  { %v48_v10 = vpack.c.bf16 %v35_v8, %v34_v7  ;;  %v38_v13 = vld [vmem:[%s810_s0 + $0x40] sm:$0xff]  ;;  %v39_v14 = vld [vmem:[%s810_s0 + $0x48] sm:$0xff]  ;;  %v49_v17 = vpack.c.bf16 %v37_v12, %v36_v11  ;;  %v588_v18 = vld [vmem:[%s813_s3 + $0x10] sm:$0xff]  }
   0x7   :  { %512 = vmatprep.mubr.msk.bf16.mxu1 %vm69_vm0, %v46_v5  ;;  %v586_v15 = vld [vmem:[%s813_s3] sm:$0xff]   ;;  %v587_v16 = vld [vmem:[%s813_s3 + $0x8] sm:$0xff]   ;;  %v50_v19 = vpack.c.bf16 %v39_v14, %v38_v13 }
   0x8   :  { %513 = vmatmul.mubr.msk.bf16.vlgmr.msra.gmra.mrb[0].mxu1 %vm69_vm0, %v47_v9  ;;  %528 = vmatprep.subr.bf16.mxu1 %v586_v15 }
   0x9   :  { %516 = vmatprep.mubr.msk.bf16.mxu1 %vm69_vm0, %v48_v10  ;;  %529 = vmatpush3.bf16.msra.mxu1 %v586_v15 }
   0xa   :  { %530 = vmatprep.subr.bf16.mxu1 %v587_v16 }
   0xb   :  { %14 = vsyncpa [#allocation4], 0  ;;  %v40_v20 = vld [vmem:[%s810_s0 + $0x50] sm:$0xff]  ;;  %v41_v21 = vld [vmem:[%s810_s0 + $0x58] sm:$0xff]  ;;  %vm651_vm1 = vmmov 0   ;;  %s653_s28 = smov [#allocation3]  }
   0xc   :  { %v42_v22 = vld [vmem:[%s810_s0 + $0x60] sm:$0xff]  ;;  %v43_v23 = vld [vmem:[%s810_s0 + $0x68] sm:$0xff]  ;;  %v51_v24 = vpack.c.bf16 %v41_v21, %v40_v20  ;;  %v44_v26 = vld [vmem:[%s810_s0 + $0x70] sm:$0xff]  ;;  %v652_v21 = vmov 0   ;;  %s449_s29 = sshll.u32 %s653_s28, 4  ;;  %s450_s29 = int_to_ptr.vmem [resolvable:$true] %s449_s29 }
   0xd   :  { %531 = vmatpush3.bf16.msra.mxu1 %v587_v16  ;;  %v52_v25 = vpack.c.bf16 %v43_v23, %v42_v22  ;;  %v45_v27 = vld [vmem:[%s810_s0 + $0x78] sm:$0xff]  ;;  %v590_v30 = vld [vmem:[%s813_s3 + $0x20] sm:$0xff]   ;;  %v591_v31 = vld [vmem:[%s813_s3 + $0x28] sm:$0xff]   ;;  %584 = vset.pattern.permute.xlu0 %v652_v21  ;;  %s626_s30 = scalar_lea.vmem %s450_s29, 16  ;;  %s630_s8 = scalar_lea.vmem %s450_s29, 32 }
   0xe   :  { %532 = vmatprep.subr.bf16.mxu1 %v588_v18  ;;  %v53_v28 = vpack.c.bf16 %v45_v27, %v44_v26  ;;  %v589_v29 = vld [vmem:[%s813_s3 + $0x18] sm:$0xff]   ;;  %v592_v32 = vld [vmem:[%s813_s3 + $0x30] sm:$0xff]   ;;  %v457_v35 = vld [vmem:[%s812_s2] ss:$0 sm:$0xff]  ;;  %p627_p0 = scmp.ne.s32.totalorder %s450_s29, %s626_s30  ;;  %p631_p1 = scmp.lt.s32.totalorder %s450_s29, %s450_s29 }
   0xf   :  { %v593_v33 = vld [vmem:[%s813_s3 + $0x38] sm:$0xff]   ;;  %v392_v20 = vld [vmem:[#allocation2] sm:$0x1]  ;;  %p632_p2 = scmp.lt.s32.totalorder %s630_s8, %s626_s30 }
  0x10   :  { %517 = vmatmul.mubr.msk.bf16.gmra.mrb[4].mxu1 %vm69_vm0, %v49_v17  ;;  %395 = vperm.xlu0 %584, %v392_v20   ;;  %v467_v23 = vld [vmem:[%s814_s4] ss:$0 sm:$0xff] }
  0x11   :  { %520 = vmatprep.mubr.msk.bf16.mxu1 %vm69_vm0, %v50_v19  ;;  %533 = vmatpush3.bf16.msra.mxu1 %v588_v18  ;;  %v650_v19 = vmov 0.0   ;;  %p633_p3 = por %p632_p2, %p631_p1 }
  0x12   :  { %534 = vmatprep.subr.bf16.mxu1 %v589_v29  ;;  %560 = vmatprep.subr.bf16.mxu0 %v650_v19 }
  0x13   :  { %576 = vmatprep.mubr.msk.bf16.mxu0 %vm651_vm1, %v650_v19  ;;  %p634_p4 = pnand %p633_p3, %p627_p0 }
  0x15   :  { %535 = vmatpush3.bf16.msra.mxu1 %v589_v29 }
  0x16   :  { %536 = vmatprep.subr.bf16.mxu1 %v590_v30 }
  0x18   :  { %521 = vmatmul.mubr.msk.bf16.gmra.mrb[8].mxu1 %vm69_vm0, %v51_v24 }
  0x19   :  { %524 = vmatprep.mubr.msk.bf16.mxu1 %vm69_vm0, %v52_v25  ;;  %537 = vmatpush3.bf16.msra.mxu1 %v590_v30 }
  0x1a   :  { %538 = vmatprep.subr.bf16.mxu1 %v591_v31 }
  0x1d   :  { %539 = vmatpush3.bf16.msra.mxu1 %v591_v31 }
  0x1e   :  { %540 = vmatprep.subr.bf16.mxu1 %v592_v32 }
  0x20   :  { %525 = vmatmul.mubr.msk.bf16.gmra.mrb[12].mxu1 %vm69_vm0, %v53_v28 }
  0x21   :  { %541 = vmatpush3.bf16.msra.mxu1 %v592_v32 }
  0x22   :  { %542 = vmatprep.subr.bf16.mxu1 %v593_v33 }
  0x25   :  { %543 = vmatpush3.bf16.msra.mxu1 %v593_v33 }
  0xdb   :  { %v514_v34 = vpop.f32.mrb[0].mxu1 }
  0xdc   :  { %v128_v36 = vpop.f32.mrb[1].mxu1  ;;  %v137_v38 = vadd.f32 %v514_v34, %v457_v35 }
  0xdd   :  { %v515_v37 = vpop.f32.mrb[2].mxu1  ;;  %v129_v41 = vadd.f32 %v457_v35, %v128_v36 }
  0xde   :  { %v140_v39 = vadd.f32 %v515_v37, %v457_v35  ;;  %v131_v40 = vpop.f32.mrb[3].mxu1 }
  0xdf   :  { %v132_v42 = vadd.f32 %v457_v35, %v131_v40 }
  0xe0   :  { %v192_v43 = vpack.c.bf16 %v140_v39, %v137_v38 }
  0xe1   :  { %v191_v44 = vpack.c.bf16 %v132_v42, %v129_v41 }
  0xe3   :  { %594 = vtanh.bf16 %v191_v44  ;;  %v518_v45 = vpop.f32.mrb[4].mxu1 }
  0xe4   :  { %596 = vtanh.bf16 %v192_v43  ;;  %v153_v46 = vadd.f32 %v518_v45, %v457_v35  ;;  %v144_v47 = vpop.f32.mrb[5].mxu1 }
  0xe5   :  { %v145_v48 = vadd.f32 %v457_v35, %v144_v47  ;;  %v519_v49 = vpop.f32.mrb[6].mxu1 }
  0xe6   :  { %v156_v50 = vadd.f32 %v519_v49, %v457_v35  ;;  %v147_v51 = vpop.f32.mrb[7].mxu1 }
  0xe7   :  { %v148_v52 = vadd.f32 %v457_v35, %v147_v51 }
  0xe8   :  { %v194_v53 = vpack.c.bf16 %v156_v50, %v153_v46 }
  0xe9   :  { %v193_v54 = vpack.c.bf16 %v148_v52, %v145_v48 }
  0xea   :  { %598 = vtanh.bf16 %v194_v53 }
  0xeb   :  { %600 = vtanh.bf16 %v193_v54  ;;  %v522_v55 = vpop.f32.mrb[8].mxu1 }
  0xec   :  { %v169_v56 = vadd.f32 %v522_v55, %v457_v35  ;;  %v160_v57 = vpop.f32.mrb[9].mxu1 }
  0xed   :  { %v161_v58 = vadd.f32 %v457_v35, %v160_v57  ;;  %v523_v59 = vpop.f32.mrb[10].mxu1 }
  0xee   :  { %v595_v60 = vpop.eup %594  ;;  %v172_v61 = vadd.f32 %v523_v59, %v457_v35  ;;  %v163_v62 = vpop.f32.mrb[11].mxu1 }
  0xef   :  { %v597_v63 = vpop.eup %596  ;;  %544 = vmatprep.mubr.bf16.mxu1 %v595_v60  ;;  %v164_v0 = vadd.f32 %v457_v35, %v163_v62 }
  0xf0   :  { %545 = vmatmul.mubr.bf16.vlgmr.msra.gmra.mrb[16].mxu1 %v597_v63  ;;  %v196_v1 = vpack.c.bf16 %v172_v61, %v169_v56 }
  0xf1   :  { %v195_v2 = vpack.c.bf16 %v164_v0, %v161_v58 }
  0xf2   :  { %602 = vtanh.bf16 %v196_v1 }
  0xf3   :  { %604 = vtanh.bf16 %v195_v2  ;;  %v526_v3 = vpop.f32.mrb[12].mxu1 }
  0xf4   :  { %v185_v4 = vadd.f32 %v526_v3, %v457_v35  ;;  %v176_v5 = vpop.f32.mrb[13].mxu1 }
  0xf5   :  { %v599_v6 = vpop.eup %598  ;;  %v177_v7 = vadd.f32 %v457_v35, %v176_v5  ;;  %v527_v8 = vpop.f32.mrb[14].mxu1 }
  0xf6   :  { %v601_v9 = vpop.eup %600  ;;  %v188_v10 = vadd.f32 %v527_v8, %v457_v35  ;;  %v179_v11 = vpop.f32.mrb[15].mxu1  ;;  %v398_v8 = vlaneseq }
  0xf7   :  { %548 = vmatprep.mubr.bf16.mxu1 %v601_v9  ;;  %v180_v12 = vadd.f32 %v457_v35, %v179_v11  ;;  %v396_v11 = vpop.permute.xlu0 %395 }
  0xf8   :  { %549 = vmatmul.mubr.bf16.gmra.mrb[20].mxu1 %v599_v6  ;;  %v198_v13 = vpack.c.bf16 %v188_v10, %v185_v4  ;;  %v399_v9 = vshrl.u32 %v398_v8, 7 }
  0xf9   :  { %v197_v14 = vpack.c.bf16 %v180_v12, %v177_v7  ;;  %v391_v7 = vld [vmem:[%s815_s5] sm:$0x1] }
  0xfa   :  { %606 = vtanh.bf16 %v198_v13  ;;  %v400_v10 = vsub.s32 0, %v399_v9 }
  0xfb   :  { %608 = vtanh.bf16 %v197_v14 }
  0xfc   :  { %v401_v12 = vrot.slane %v396_v11, %v400_v10 }
  0xfd   :  { %v603_v15 = vpop.eup %602 }
  0xfe   :  { %v605_v16 = vpop.eup %604 }
  0xff   :  { %552 = vmatprep.mubr.bf16.mxu1 %v605_v16 }
 0x100   :  { %553 = vmatmul.mubr.bf16.gmra.mrb[24].mxu1 %v603_v15 }
 0x105   :  { %v607_v17 = vpop.eup %606 }
 0x106   :  { %v609_v18 = vpop.eup %608 }
 0x107   :  { %556 = vmatprep.mubr.bf16.mxu1 %v609_v18 }
 0x108   :  { %557 = vmatmul.mubr.bf16.gmra.mrb[28].mxu1 %v607_v17 }
 0x1c3   :  { %v546_v22 = vpop.f32.mrb[16].mxu1 }
 0x1c4   :  { %v312_v24 = vpop.f32.mrb[17].mxu1  ;;  %v321_v26 = vadd.f32 %v546_v22, %v467_v23 }
 0x1c5   :  { %v547_v25 = vpop.f32.mrb[18].mxu1  ;;  %v313_v29 = vadd.f32 %v467_v23, %v312_v24 }
 0x1c6   :  { %v324_v27 = vadd.f32 %v547_v25, %v467_v23  ;;  %v315_v28 = vpop.f32.mrb[19].mxu1 }
 0x1c7   :  { %v316_v30 = vadd.f32 %v467_v23, %v315_v28 }
 0x1c8   :  { %v376_v31 = vpack.c.bf16 %v324_v27, %v321_v26 }
 0x1c9   :  { %v375_v32 = vpack.c.bf16 %v316_v30, %v313_v29 }
 0x1cb   :  { %610 = vtanh.bf16 %v375_v32  ;;  %v550_v33 = vpop.f32.mrb[20].mxu1 }
 0x1cc   :  { %v337_v34 = vadd.f32 %v550_v33, %v467_v23  ;;  %v328_v35 = vpop.f32.mrb[21].mxu1  ;;  %612 = vtanh.bf16 %v376_v31 }
 0x1cd   :  { %v329_v36 = vadd.f32 %v467_v23, %v328_v35  ;;  %v551_v37 = vpop.f32.mrb[22].mxu1 }
 0x1ce   :  { %v340_v38 = vadd.f32 %v551_v37, %v467_v23  ;;  %v331_v39 = vpop.f32.mrb[23].mxu1 }
 0x1cf   :  { %v332_v40 = vadd.f32 %v467_v23, %v331_v39 }
 0x1d0   :  { %v378_v41 = vpack.c.bf16 %v340_v38, %v337_v34 }
 0x1d1   :  { %v377_v42 = vpack.c.bf16 %v332_v40, %v329_v36 }
 0x1d3   :  { %v554_v43 = vpop.f32.mrb[24].mxu1  ;;  %614 = vtanh.bf16 %v377_v42 }
 0x1d4   :  { %v353_v44 = vadd.f32 %v554_v43, %v467_v23  ;;  %v344_v45 = vpop.f32.mrb[25].mxu1  ;;  %616 = vtanh.bf16 %v378_v41 }
 0x1d5   :  { %v345_v46 = vadd.f32 %v467_v23, %v344_v45  ;;  %v555_v47 = vpop.f32.mrb[26].mxu1 }
 0x1d6   :  { %v611_v48 = vpop.eup %610  ;;  %v356_v49 = vadd.f32 %v555_v47, %v467_v23  ;;  %v347_v50 = vpop.f32.mrb[27].mxu1 }
 0x1d7   :  { %561 = vmatpush3.bf16.xpose.msra.mxu0 %v611_v48  ;;  %v348_v51 = vadd.f32 %v467_v23, %v347_v50  ;;  %v613_v59 = vpop.eup %612 }
 0x1d8   :  { %v380_v52 = vpack.c.bf16 %v356_v49, %v353_v44  ;;  %562 = vmatprep.subr.bf16.mxu0 %v650_v19 }
 0x1d9   :  { %v379_v53 = vpack.c.bf16 %v348_v51, %v345_v46 }
 0x1db   :  { %v558_v54 = vpop.f32.mrb[28].mxu1  ;;  %618 = vtanh.bf16 %v379_v53 }
 0x1dc   :  { %v369_v55 = vadd.f32 %v558_v54, %v467_v23  ;;  %v360_v56 = vpop.f32.mrb[29].mxu1  ;;  %620 = vtanh.bf16 %v380_v52 }
 0x1dd   :  { %v361_v57 = vadd.f32 %v467_v23, %v360_v56  ;;  %v559_v58 = vpop.f32.mrb[30].mxu1 }
 0x1de   :  { %v372_v60 = vadd.f32 %v559_v58, %v467_v23  ;;  %v363_v61 = vpop.f32.mrb[31].mxu1  ;;  %v615_v1 = vpop.eup %614 }
 0x1df   :  { %563 = vmatpush3.bf16.xpose.msra.mxu0 %v613_v59  ;;  %v364_v62 = vadd.f32 %v467_v23, %v363_v61  ;;  %v617_v2 = vpop.eup %616 }
 0x1e0   :  { %564 = vmatprep.subr.bf16.mxu0 %v650_v19  ;;  %v382_v63 = vpack.c.bf16 %v372_v60, %v369_v55 }
 0x1e1   :  { %v381_v0 = vpack.c.bf16 %v364_v62, %v361_v57 }
 0x1e3   :  { %622 = vtanh.bf16 %v381_v0 }
 0x1e4   :  { %624 = vtanh.bf16 %v382_v63 }
 0x1e6   :  { %v619_v3 = vpop.eup %618 }
 0x1e7   :  { %565 = vmatpush3.bf16.xpose.msra.mxu0 %v615_v1  ;;  %v621_v4 = vpop.eup %620 }
 0x1e8   :  { %566 = vmatprep.subr.bf16.mxu0 %v650_v19 }
 0x1ee   :  { %v623_v5 = vpop.eup %622 }
 0x1ef   :  { %567 = vmatpush3.bf16.xpose.msra.mxu0 %v617_v2  ;;  %v625_v6 = vpop.eup %624 }
 0x1f0   :  { %568 = vmatprep.subr.bf16.mxu0 %v650_v19 }
 0x1f7   :  { %569 = vmatpush3.bf16.xpose.msra.mxu0 %v619_v3 }
 0x1f8   :  { %570 = vmatprep.subr.bf16.mxu0 %v650_v19 }
 0x1ff   :  { %571 = vmatpush3.bf16.xpose.msra.mxu0 %v621_v4 }
 0x200   :  { %572 = vmatprep.subr.bf16.mxu0 %v650_v19 }
 0x207   :  { %573 = vmatpush3.bf16.xpose.msra.mxu0 %v623_v5 }
 0x208   :  { %574 = vmatprep.subr.bf16.mxu0 %v650_v19 }
 0x20f   :  { %575 = vmatpush3.bf16.xpose.msra.mxu0 %v625_v6 }
 0x216   :  { %577 = vmatmul.mubr.bf16.vlgmr.msra.gmra.mrb[0].mxu0 %v391_v7 }
 0x2e9   :  { %v436_v13 = vpop.f32.mrb[0].mxu0 }
 0x2ea   :  { %v437_v14 = vadd.f32 %v436_v13, %v401_v12  ;;  %v578_v15 = vpop.f32.mrb[1].mxu0 }
 0x2eb   :  { %v439_v16 = vpop.f32.mrb[2].mxu0 }
 0x2ec   :  { %442 = vst [vmem:[#allocation3] sm:$0x1] %v437_v14  ;;  %v579_v17 = vpop.f32.mrb[3].mxu0 }
 0x2ed   :  { %637 = shalt.err (!%p634_p4)
}
 0x2ee   :  { %s638_s10 = scalar_lea.hbm %s817_s7, 16 }
 0x2ef   :  { %p639_p5 = scmp.ne.s32.totalorder %s817_s7, %s638_s10  ;;  %p642_p6 = scmp.lt.u32.totalorder %s638_s10, %s817_s7 }
 0x2f1   :  { %p644_p7 = pnand %p642_p6, %p639_p5 }
 0x2f3   :  { %647 = shalt.err (!%p644_p7)
}
 0x2f4   :  { %452 = dma.vmem_to_hbm [thread:$0]  %s450_s29, 16, %s817_s7, [#allocation4]  }
 0x2f5   :  { %648 = dma.done.wait [#allocation4], 16  }
 0x2f6   :  { %649 = vsyncadd [#allocation4], 4294967280 }
 0x2f7   :  { %456 = vsyncpa [#allocation4], 1 }

</bundles_post_ra>
